<compile_context>
chip_gen: v7x
topology: tpu7x:2x2x1
jax: 0.10.0
libtpu: 0.0.40
codegen_flags: <defaults>
</compile_context>

<pallas_src>
import jax
import jax.numpy as jnp
from jax.experimental import pallas as pl
from jax.experimental.pallas import tpu as pltpu


def _round_up(n, m):
    return (n + m - 1) // m * m


def mlp_kernel(x_ref, w1_ref, b1_ref, w2_ref, b2_ref, o_ref):
    # x: (TB, D) activation tile (pipelined). Weights/biases are VMEM-resident
    # (constant index maps, single-buffered), so each grid step only DMAs one
    # activation tile in and one out.
    x = x_ref[...]
    x_f32 = x.astype(jnp.float32)                        # residual kept in f32

    # Linear 1 (c_fc): LHS cast to weight dtype so bf16 weights hit the bf16
    # MXU path on v6e/v7x; accumulate in f32.
    h = jnp.dot(x.astype(w1_ref.dtype), w1_ref[...],
                preferred_element_type=jnp.float32)
    h = jnp.maximum(h + b1_ref[...], 0.0)                # bias + ReLU, f32 VPU

    # Linear 2 (c_proj): ReLU output cast down to the weight dtype so the
    # second dot also rides the bf16 MXU path and the intermediate stays small.
    y = jnp.dot(h.astype(w2_ref.dtype), w2_ref[...],
                preferred_element_type=jnp.float32)
    y = y + b2_ref[...]

    # TODO(synk): dropout>0 / training-mode masking not implemented
    # (p == 0 or eval mode -> identity, which matches this module's config).
    o_ref[...] = (y + x_f32).astype(o_ref.dtype)         # residual add in f32


def _vmem_limit_bytes():
    """Generation-aware VMEM cap with ~15% headroom; conservative fallback."""
    cap = None
    try:
        info = pltpu.get_tpu_info()
        cap = int(getattr(info, "vmem_capacity_bytes", 0)) or None
    except Exception:
        cap = None
    if cap is None:
        cap = 64 << 20            # safe on every generation (v7x has 64 MiB/TC)
    return max(32 << 20, int(cap * 0.85))


def _choose_block_b(B, D, x_itemsize, out_itemsize, resident_bytes, vmem_limit):
    """Largest batch tile that fits VMEM after resident weights + temporaries."""
    Bp8 = _round_up(B, 8)
    # Per-row VMEM: double-buffered x/out tiles + f32 intermediates (x_f32, h, y).
    per_row = D * (2 * x_itemsize + 2 * out_itemsize + 3 * 4)
    budget = max(vmem_limit - resident_bytes - (4 << 20), per_row * 8)
    max_bb = max(8, min(1024, (budget // per_row) // 8 * 8))
    if Bp8 <= max_bb:
        # Whole batch in one step; split big single blocks in two so both of
        # v7x's TensorCores get work (v5e/v6e: just two pipelined steps).
        if Bp8 >= 1024 and (Bp8 // 2) % 8 == 0:
            return Bp8 // 2
        return Bp8
    # Multi-block: prefer a block size that divides Bp8 (no extra padding).
    for cand in range(max_bb, 7, -8):
        if Bp8 % cand == 0:
            return cand
    return max_bb


def mlp_forward(x, w1, b1, w2, b2, out_dim, *, block_b=None,
                weight_dtype=jnp.bfloat16):
    """Fused MLP: relu(x@W1+b1)@W2+b2 + x, reshaped to (B, *out_dim).

    x  : (B, ...) whose trailing dims flatten to D
    w1 : (D, D) weight already transposed to (in, out) layout
    b1 : (D,)   bias (kept f32 in the kernel)
    w2 : (D, D) weight, (in, out) layout
    b2 : (D,)
    weight_dtype : dtype the weights are pre-cast to (bf16 default for the
                   fast MXU path; pass jnp.float32 or None to keep as-is).
    """
    B = x.shape[0]
    D = w1.shape[0]
    out_dtype = x.dtype
    x2 = x.reshape(B, D)                                 # x.view(B, -1)

    if weight_dtype is not None:
        w1 = w1.astype(weight_dtype)
        w2 = w2.astype(weight_dtype)
    b1_2 = b1.reshape(1, D).astype(jnp.float32)
    b2_2 = b2.reshape(1, D).astype(jnp.float32)

    w_bytes = (w1.size * jnp.dtype(w1.dtype).itemsize
               + w2.size * jnp.dtype(w2.dtype).itemsize)
    resident_bytes = w_bytes + 2 * D * 4                 # + the two f32 biases

    vmem_limit = _vmem_limit_bytes()
    if block_b is None:
        block_b = _choose_block_b(B, D, x2.dtype.itemsize,
                                  jnp.dtype(out_dtype).itemsize,
                                  resident_bytes, vmem_limit)

    Bp = _round_up(B, block_b)
    if Bp != B:
        # With auto block_b this pads at most 7 rows (block divides round_up(B,8)).
        x2 = jnp.pad(x2, ((0, Bp - B), (0, 0)))
    n_blocks = Bp // block_b

    cost = pl.CostEstimate(
        flops=2 * 2 * Bp * D * D,                        # two (Bp,D)x(D,D) matmuls
        transcendentals=0,
        bytes_accessed=(w_bytes + 2 * D * 4
                        + Bp * D * (x2.dtype.itemsize
                                    + jnp.dtype(out_dtype).itemsize)),
    )

    def _run(single_buffer):
        def const_spec(shape):
            imap = lambda i, _s=shape: (0,) * len(_s)
            if single_buffer and hasattr(pl, "Buffered"):
                # Constant index map -> no pipelining needed; single buffer
                # halves the resident VMEM for these operands.
                return pl.BlockSpec(shape, imap, pipeline_mode=pl.Buffered(1))
            return pl.BlockSpec(shape, imap)

        return pl.pallas_call(
            mlp_kernel,
            out_shape=jax.ShapeDtypeStruct((Bp, D), out_dtype),
            grid_spec=pltpu.PrefetchScalarGridSpec(
                num_scalar_prefetch=0,
                grid=(n_blocks,),
                in_specs=[
                    pl.BlockSpec((block_b, D), lambda i: (i, 0)),  # x (pipelined)
                    const_spec((D, D)),                            # W1, resident
                    const_spec((1, D)),                            # b1, resident
                    const_spec((D, D)),                            # W2, resident
                    const_spec((1, D)),                            # b2, resident
                ],
                out_specs=pl.BlockSpec((block_b, D), lambda i: (i, 0)),
            ),
            compiler_params=pltpu.CompilerParams(
                dimension_semantics=("parallel",),   # batch blocks shard across TCs
                vmem_limit_bytes=vmem_limit,
            ),
            cost_estimate=cost,
        )(x2, w1, b1_2, w2, b2_2)

    try:
        out = _run(single_buffer=True)
    except Exception:
        # Fallback if this JAX build rejects pl.Buffered(1) on constant specs.
        out = _run(single_buffer=False)

    if Bp != B:
        out = out[:B]
    return out.reshape(B, *out_dim)                      # x.view(B, *out_dim)


if __name__ == "__main__":
    # Small shapes consistent with the module:
    #   input x: (B, 8, 16)  ->  flattened in_dim D = 128, out_dim = (8, 16)
    B = 32
    out_dim = (8, 16)
    D = out_dim[0] * out_dim[1]        # in_dim = 128
    dropout = 0.0                      # -> self.dropout is None in the module

    key = jax.random.PRNGKey(0)
    kx, kw1, kb1, kw2, kb2 = jax.random.split(key, 5)

    x = jax.random.normal(kx, (B, *out_dim), dtype=jnp.float32)

    # Deterministic "Linear" parameters. PyTorch stores weight as (out, in);
    # generate (out, in) then transpose to (in, out) for the kernel.
    bound = 1.0 / (D ** 0.5)
    w1_pt = jax.random.uniform(kw1, (D, D), jnp.float32, -bound, bound)
    b1 = jax.random.uniform(kb1, (D,), jnp.float32, -bound, bound)
    w2_pt = jax.random.uniform(kw2, (D, D), jnp.float32, -bound, bound)
    b2 = jax.random.uniform(kb2, (D,), jnp.float32, -bound, bound)
    w1 = w1_pt.T
    w2 = w2_pt.T

    # Pure-JAX reference.
    x2 = x.reshape(B, D)
    h_ref = jnp.maximum(x2 @ w1 + b1, 0.0)
    ref = (h_ref @ w2 + b2 + x2).reshape(B, *out_dim)

    # 1) f32-weight path, auto blocking -> single grid step (batch fits VMEM).
    out_f32 = mlp_forward(x, w1, b1, w2, b2, out_dim, weight_dtype=jnp.float32)
    jax.block_until_ready(out_f32)
    assert out_f32.shape == (B, *out_dim)
    assert jnp.allclose(out_f32, ref, atol=1e-5, rtol=1e-5)

    # 2) Default path: weights pre-cast to bf16 (fast MXU path, half the weight
    #    VMEM); f32 accumulation + f32 epilogue bound the numeric error.
    out_bf16 = mlp_forward(x, w1, b1, w2, b2, out_dim)
    jax.block_until_ready(out_bf16)
    assert out_bf16.shape == (B, *out_dim)
    assert jnp.allclose(out_bf16, ref, atol=1e-1, rtol=0)

    # 3) Multi-block path (2 pipelined grid steps) to exercise the grid loop.
    out_mb = mlp_forward(x, w1, b1, w2, b2, out_dim,
                         weight_dtype=jnp.float32, block_b=16)
    jax.block_until_ready(out_mb)
    assert jnp.allclose(out_mb, ref, atol=1e-5, rtol=1e-5)

    print("KERNEL_OK")
</pallas_src>

<mosaic_0001>
module attributes {stable_mosaic.version = 11 : i64} {
  func.func @mlp_kernel(%arg0: i32, %arg1: memref<32x128xf32, #tpu.memory_space<vmem>>, %arg2: memref<128x128xf32, #tpu.memory_space<vmem>>, %arg3: memref<1x128xf32, #tpu.memory_space<vmem>>, %arg4: memref<128x128xf32, #tpu.memory_space<vmem>>, %arg5: memref<1x128xf32, #tpu.memory_space<vmem>>, %arg6: memref<32x128xf32, #tpu.memory_space<vmem>>) attributes {dimension_semantics = [#tpu.dimension_semantics<parallel>], iteration_bounds = array<i64: 1>, scalar_prefetch = 0 : i64, scratch_operands = 0 : i64, tpu.core_type = #tpu.core_type<tc>, window_params = [{transform_indices = @transform_0, window_bounds = array<i64: 32, 128>}, {pipeline_mode = #tpu.pipeline_mode<synchronous>, transform_indices = @transform_1, window_bounds = array<i64: 128, 128>}, {pipeline_mode = #tpu.pipeline_mode<synchronous>, transform_indices = @transform_2, window_bounds = array<i64: 1, 128>}, {pipeline_mode = #tpu.pipeline_mode<synchronous>, transform_indices = @transform_3, window_bounds = array<i64: 128, 128>}, {pipeline_mode = #tpu.pipeline_mode<synchronous>, transform_indices = @transform_4, window_bounds = array<i64: 1, 128>}, {transform_indices = @transform_5, window_bounds = array<i64: 32, 128>}]} {
    %c0 = arith.constant 0 : index
    %c0_0 = arith.constant 0 : index
    %0 = vector.load %arg1[%c0, %c0_0] : memref<32x128xf32, #tpu.memory_space<vmem>>, vector<32x128xf32>
    %c0_1 = arith.constant 0 : index
    %c0_2 = arith.constant 0 : index
    %1 = vector.load %arg2[%c0_1, %c0_2] : memref<128x128xf32, #tpu.memory_space<vmem>>, vector<128x128xf32>
    %cst = arith.constant dense<0.000000e+00> : vector<32x128xf32>
    %2 = tpu.matmul %0, %1, %cst {dimension_numbers = #tpu.dot_dimension_numbers<[1], [0], [0], [1], [0, 0, 1, 1], [], []>} : vector<32x128xf32>, vector<128x128xf32>, vector<32x128xf32> -> vector<32x128xf32>
    %c0_3 = arith.constant 0 : index
    %c0_4 = arith.constant 0 : index
    %3 = vector.load %arg3[%c0_3, %c0_4] : memref<1x128xf32, #tpu.memory_space<vmem>>, vector<1x128xf32>
    %4 = vector.broadcast %3 : vector<1x128xf32> to vector<32x128xf32>
    %5 = arith.addf %2, %4 : vector<32x128xf32>
    %cst_5 = arith.constant 0.000000e+00 : f32
    %6 = vector.broadcast %cst_5 : f32 to vector<32x128xf32>
    %7 = arith.maximumf %5, %6 : vector<32x128xf32>
    %c0_6 = arith.constant 0 : index
    %c0_7 = arith.constant 0 : index
    %8 = vector.load %arg4[%c0_6, %c0_7] : memref<128x128xf32, #tpu.memory_space<vmem>>, vector<128x128xf32>
    %cst_8 = arith.constant dense<0.000000e+00> : vector<32x128xf32>
    %9 = tpu.matmul %7, %8, %cst_8 {dimension_numbers = #tpu.dot_dimension_numbers<[1], [0], [0], [1], [0, 0, 1, 1], [], []>} : vector<32x128xf32>, vector<128x128xf32>, vector<32x128xf32> -> vector<32x128xf32>
    %c0_9 = arith.constant 0 : index
    %c0_10 = arith.constant 0 : index
    %10 = vector.load %arg5[%c0_9, %c0_10] : memref<1x128xf32, #tpu.memory_space<vmem>>, vector<1x128xf32>
    %11 = vector.broadcast %10 : vector<1x128xf32> to vector<32x128xf32>
    %12 = arith.addf %9, %11 : vector<32x128xf32>
    %13 = arith.addf %12, %0 : vector<32x128xf32>
    %c0_11 = arith.constant 0 : index
    %c0_12 = arith.constant 0 : index
    %14 = vector.load %arg6[%c0_11, %c0_12] : memref<32x128xf32, #tpu.memory_space<vmem>>, vector<32x128xf32>
    tpu.vector_store %arg6[%c0_11, %c0_12], %13 {strides = array<i32>} : memref<32x128xf32, #tpu.memory_space<vmem>>, vector<32x128xf32>,
    return
  }
  func.func @transform_0(%arg0: i32) -> (i32, i32) {
    %c0_i32 = arith.constant 0 : i32
    %c0_i32_0 = arith.constant 0 : i32
    return %arg0, %c0_i32 : i32, i32
  }
  func.func @transform_1(%arg0: i32) -> (i32, i32) {
    %c0_i32 = arith.constant 0 : i32
    %c0_i32_0 = arith.constant 0 : i32
    %c0_i32_1 = arith.constant 0 : i32
    return %c0_i32, %c0_i32_0 : i32, i32
  }
  func.func @transform_2(%arg0: i32) -> (i32, i32) {
    %c0_i32 = arith.constant 0 : i32
    %c0_i32_0 = arith.constant 0 : i32
    %c0_i32_1 = arith.constant 0 : i32
    return %c0_i32, %c0_i32_0 : i32, i32
  }
  func.func @transform_3(%arg0: i32) -> (i32, i32) {
    %c0_i32 = arith.constant 0 : i32
    %c0_i32_0 = arith.constant 0 : i32
    %c0_i32_1 = arith.constant 0 : i32
    return %c0_i32, %c0_i32_0 : i32, i32
  }
  func.func @transform_4(%arg0: i32) -> (i32, i32) {
    %c0_i32 = arith.constant 0 : i32
    %c0_i32_0 = arith.constant 0 : i32
    %c0_i32_1 = arith.constant 0 : i32
    return %c0_i32, %c0_i32_0 : i32, i32
  }
  func.func @transform_5(%arg0: i32) -> (i32, i32) {
    %c0_i32 = arith.constant 0 : i32
    %c0_i32_0 = arith.constant 0 : i32
    return %arg0, %c0_i32 : i32, i32
  }
}

module attributes {stable_mosaic.version = 11 : i64} {
  func.func @mlp_kernel(%arg0: i32, %arg1: memref<32x128xf32, #tpu.memory_space<vmem>>, %arg2: memref<128x128xf32, #tpu.memory_space<vmem>>, %arg3: memref<1x128xf32, #tpu.memory_space<vmem>>, %arg4: memref<128x128xf32, #tpu.memory_space<vmem>>, %arg5: memref<1x128xf32, #tpu.memory_space<vmem>>, %arg6: memref<32x128xf32, #tpu.memory_space<vmem>>) attributes {dimension_semantics = [#tpu.dimension_semantics<parallel>], iteration_bounds = array<i64: 1>, scalar_prefetch = 0 : i64, scratch_operands = 0 : i64, tpu.core_type = #tpu.core_type<tc>, window_params = [{transform_indices = @transform_0, window_bounds = array<i64: 32, 128>}, {pipeline_mode = #tpu.pipeline_mode<synchronous>, transform_indices = @transform_1, window_bounds = array<i64: 128, 128>}, {pipeline_mode = #tpu.pipeline_mode<synchronous>, transform_indices = @transform_2, window_bounds = array<i64: 1, 128>}, {pipeline_mode = #tpu.pipeline_mode<synchronous>, transform_indices = @transform_3, window_bounds = array<i64: 128, 128>}, {pipeline_mode = #tpu.pipeline_mode<synchronous>, transform_indices = @transform_4, window_bounds = array<i64: 1, 128>}, {transform_indices = @transform_5, window_bounds = array<i64: 32, 128>}]} {
    %c0 = arith.constant 0 : index
    %c0_0 = arith.constant 0 : index
    %0 = vector.load %arg1[%c0, %c0_0] : memref<32x128xf32, #tpu.memory_space<vmem>>, vector<32x128xf32>
    %c0_1 = arith.constant 0 : index
    %c0_2 = arith.constant 0 : index
    %1 = vector.load %arg2[%c0_1, %c0_2] : memref<128x128xf32, #tpu.memory_space<vmem>>, vector<128x128xf32>
    %cst = arith.constant dense<0.000000e+00> : vector<32x128xf32>
    %2 = tpu.matmul %0, %1, %cst {dimension_numbers = #tpu.dot_dimension_numbers<[1], [0], [0], [1], [0, 0, 1, 1], [], []>} : vector<32x128xf32>, vector<128x128xf32>, vector<32x128xf32> -> vector<32x128xf32>
    %c0_3 = arith.constant 0 : index
    %c0_4 = arith.constant 0 : index
    %3 = vector.load %arg3[%c0_3, %c0_4] : memref<1x128xf32, #tpu.memory_space<vmem>>, vector<1x128xf32>
    %4 = vector.broadcast %3 : vector<1x128xf32> to vector<32x128xf32>
    %5 = arith.addf %2, %4 : vector<32x128xf32>
    %cst_5 = arith.constant 0.000000e+00 : f32
    %6 = vector.broadcast %cst_5 : f32 to vector<32x128xf32>
    %7 = arith.maximumf %5, %6 : vector<32x128xf32>
    %c0_6 = arith.constant 0 : index
    %c0_7 = arith.constant 0 : index
    %8 = vector.load %arg4[%c0_6, %c0_7] : memref<128x128xf32, #tpu.memory_space<vmem>>, vector<128x128xf32>
    %cst_8 = arith.constant dense<0.000000e+00> : vector<32x128xf32>
    %9 = tpu.matmul %7, %8, %cst_8 {dimension_numbers = #tpu.dot_dimension_numbers<[1], [0], [0], [1], [0, 0, 1, 1], [], []>} : vector<32x128xf32>, vector<128x128xf32>, vector<32x128xf32> -> vector<32x128xf32>
    %c0_9 = arith.constant 0 : index
    %c0_10 = arith.constant 0 : index
    %10 = vector.load %arg5[%c0_9, %c0_10] : memref<1x128xf32, #tpu.memory_space<vmem>>, vector<1x128xf32>
    %11 = vector.broadcast %10 : vector<1x128xf32> to vector<32x128xf32>
    %12 = arith.addf %9, %11 : vector<32x128xf32>
    %13 = arith.addf %12, %0 : vector<32x128xf32>
    %c0_11 = arith.constant 0 : index
    %c0_12 = arith.constant 0 : index
    %14 = vector.load %arg6[%c0_11, %c0_12] : memref<32x128xf32, #tpu.memory_space<vmem>>, vector<32x128xf32>
    tpu.vector_store %arg6[%c0_11, %c0_12], %13 {strides = array<i32>} : memref<32x128xf32, #tpu.memory_space<vmem>>, vector<32x128xf32>,
    return
  }
  func.func @transform_0(%arg0: i32) -> (i32, i32) {
    %c0_i32 = arith.constant 0 : i32
    %c0_i32_0 = arith.constant 0 : i32
    return %arg0, %c0_i32 : i32, i32
  }
  func.func @transform_1(%arg0: i32) -> (i32, i32) {
    %c0_i32 = arith.constant 0 : i32
    %c0_i32_0 = arith.constant 0 : i32
    %c0_i32_1 = arith.constant 0 : i32
    return %c0_i32, %c0_i32_0 : i32, i32
  }
  func.func @transform_2(%arg0: i32) -> (i32, i32) {
    %c0_i32 = arith.constant 0 : i32
    %c0_i32_0 = arith.constant 0 : i32
    %c0_i32_1 = arith.constant 0 : i32
    return %c0_i32, %c0_i32_0 : i32, i32
  }
  func.func @transform_3(%arg0: i32) -> (i32, i32) {
    %c0_i32 = arith.constant 0 : i32
    %c0_i32_0 = arith.constant 0 : i32
    %c0_i32_1 = arith.constant 0 : i32
    return %c0_i32, %c0_i32_0 : i32, i32
  }
  func.func @transform_4(%arg0: i32) -> (i32, i32) {
    %c0_i32 = arith.constant 0 : i32
    %c0_i32_0 = arith.constant 0 : i32
    %c0_i32_1 = arith.constant 0 : i32
    return %c0_i32, %c0_i32_0 : i32, i32
  }
  func.func @transform_5(%arg0: i32) -> (i32, i32) {
    %c0_i32 = arith.constant 0 : i32
    %c0_i32_0 = arith.constant 0 : i32
    return %arg0, %c0_i32 : i32, i32
  }
}

</mosaic_0001>

<bundles_post_ra>
// kernel: tpu_custom_call.1
= control target key start
LH: loop header
LB: loop body
LE: loop exit
PB: predicated region body
PF: predicated region fallthrough
CT: control target
= control target key end

     0   :  { %10 = vsyncpa [#allocation3], 0  ;;  %s707_s0 = inlined_call_operand.hbm [shape: f32[32,128], index: 0, kind: input, shape index: {}]   ;;  %s708_s1 = inlined_call_operand.hbm [shape: f32[128,128], index: 1, kind: input, shape index: {}]   ;;  %s709_s2 = inlined_call_operand.vmem [shape: f32[1,128], index: 2, kind: input, shape index: {}]   ;;  %s710_s3 = inlined_call_operand.hbm [shape: f32[128,128], index: 3, kind: input, shape index: {}]   ;;  %s711_s4 = inlined_call_operand.vmem [shape: f32[1,128], index: 4, kind: input, shape index: {}]   ;;  %s712_s5 = inlined_call_operand.hbm [shape: f32[32,128], index: 5, kind: output, shape index: {}]  }
   0x1   :  { %11 = vsyncpa [#allocation6], 0 }
   0x2   :  { %12 = vsyncpa [#allocation4], 0  ;;  %s594_s18 = smov [#allocation5]   ;;  %s595_s20 = smov [#allocation2]  }
   0x3   :  { %s30_s19 = sshll.u32 %s594_s18, 4  ;;  %s18_s21 = sshll.u32 %s595_s20, 4  ;;  %s31_s19 = int_to_ptr.vmem [resolvable:$true] %s30_s19  ;;  %s630_s21 = int_to_ptr.vmem [resolvable:$true] %s18_s21 }
   0x4   :  { %s500_s24 = scalar_lea.hbm %s708_s1, 2048 }
   0x5   :  { %p501_p0 = scmp.ne.s32.totalorder %s708_s1, %s500_s24  ;;  %p504_p1 = scmp.lt.u32.totalorder %s500_s24, %s708_s1 }
   0x7   :  { %p506_p2 = pnand %p504_p1, %p501_p0 }
   0x9   :  { %509 = shalt.err (!%p506_p2)
}
   0xa   :  { %s510_s29 = scalar_lea.vmem %s31_s19, 2048  ;;  %p515_p4 = scmp.lt.s32.totalorder %s31_s19, %s31_s19 }
   0xb   :  { %p511_p3 = scmp.ne.s32.totalorder %s31_s19, %s510_s29  ;;  %p516_p5 = scmp.lt.s32.totalorder %s510_s29, %s510_s29 }
   0xd   :  { %p517_p6 = por %p516_p5, %p515_p4 }
   0xf   :  { %p518_p7 = pnand %p517_p6, %p511_p3 }
  0x11   :  { %521 = shalt.err (!%p518_p7)
}
  0x12   :  { %s596_s30 = smov 128   ;;  %s597_s6 = smov 8  }
  0x13   :  { %36 = dma.hbm_to_vmem [thread:$0]  %s708_s1, 2048, %s31_s19, [#allocation6], %s596_s30, %s596_s30, %s597_s6  }
  0x14   :  { %s522_s11 = scalar_lea.hbm %s707_s0, 512 }
  0x15   :  { %p523_p8 = scmp.ne.s32.totalorder %s707_s0, %s522_s11  ;;  %p526_p9 = scmp.lt.u32.totalorder %s522_s11, %s707_s0 }
  0x17   :  { %p528_p10 = pnand %p526_p9, %p523_p8 }
  0x19   :  { %531 = shalt.err (!%p528_p10)
}
  0x1a   :  { %s532_s16 = scalar_lea.vmem %s630_s21, 512  ;;  %p537_p12 = scmp.lt.s32.totalorder %s630_s21, %s630_s21 }
  0x1b   :  { %p533_p11 = scmp.ne.s32.totalorder %s630_s21, %s532_s16  ;;  %p538_p13 = scmp.lt.s32.totalorder %s532_s16, %s532_s16 }
  0x1d   :  { %p539_p0 = por %p538_p13, %p537_p12 }
  0x1f   :  { %p540_p1 = pnand %p539_p0, %p533_p11 }
  0x21   :  { %543 = shalt.err (!%p540_p1)
}
  0x22   :  { %24 = dma.hbm_to_vmem [thread:$0]  %s707_s0, 512, %s630_s21, [#allocation3], %s596_s30, %s596_s30, %s597_s6  }
  0x23   :  { %s598_s18 = smov [#allocation7]   ;;  %s544_s23 = scalar_lea.hbm %s710_s3, 2048 }
  0x24   :  { %s44_s19 = sshll.u32 %s598_s18, 4  ;;  %p545_p2 = scmp.ne.s32.totalorder %s710_s3, %s544_s23  ;;  %s45_s19 = int_to_ptr.vmem [resolvable:$true] %s44_s19 }
  0x25   :  { %p548_p3 = scmp.lt.u32.totalorder %s544_s23, %s710_s3 }
  0x27   :  { %p550_p4 = pnand %p548_p3, %p545_p2 }
  0x29   :  { %553 = shalt.err (!%p550_p4)
}
  0x2a   :  { %s554_s28 = scalar_lea.vmem %s45_s19, 2048  ;;  %p559_p6 = scmp.lt.s32.totalorder %s45_s19, %s45_s19 }
  0x2b   :  { %p555_p5 = scmp.ne.s32.totalorder %s45_s19, %s554_s28  ;;  %p560_p7 = scmp.lt.s32.totalorder %s554_s28, %s554_s28 }
  0x2d   :  { %p561_p8 = por %p560_p7, %p559_p6 }
  0x2f   :  { %p562_p9 = pnand %p561_p8, %p555_p5 }
  0x31   :  { %565 = shalt.err (!%p562_p9)
}
  0x32   :  { %50 = dma.hbm_to_vmem [thread:$0]  %s710_s3, 2048, %s45_s19, [#allocation6], %s596_s30, %s596_s30, %s597_s6  }
  0x33   :  { %588 = dma.done.wait [#allocation3], 512  }
  0x34   :  { %589 = vsyncadd [#allocation3], 4294966784 }
  0x35   :  { %590 = dma.done.wait [#allocation6], 4096  }
  0x36   :  { %591 = vsyncadd [#allocation6], 4294963200  ;;  %v66_v0 = vld [vmem:[#allocation5] sm:$0xff]  ;;  %v67_v1 = vld [vmem:[#allocation5 + $0x8] sm:$0xff] }
  0x37   :  { %v68_v2 = vld [vmem:[#allocation5 + $0x10] sm:$0xff]  ;;  %v430_v3 = vpack.c.bf16 %v67_v1, %v66_v0  ;;  %v69_v4 = vld [vmem:[#allocation5 + $0x18] sm:$0xff]  ;;  %v70_v6 = vld [vmem:[#allocation5 + $0x20] sm:$0xff] }
  0x38   :  { %v434_v5 = vpack.c.bf16 %v69_v4, %v68_v2  ;;  %v71_v7 = vld [vmem:[#allocation5 + $0x28] sm:$0xff]  ;;  %v682_v9 = vld [vmem:[#allocation2] sm:$0xff]  ;;  %v72_v10 = vld [vmem:[#allocation5 + $0x30] sm:$0xff] }
  0x39   :  { %431 = vmatprep.subr.bf16.mxu0 %v430_v3  ;;  %v438_v8 = vpack.c.bf16 %v71_v7, %v70_v6  ;;  %v73_v11 = vld [vmem:[#allocation5 + $0x38] sm:$0xff]  ;;  %386 = vmatprep.mubr.f32.mxu0 %v682_v9  ;;  %v178_v12 = vld [vmem:[#allocation7] sm:$0xff]  ;;  %v179_v13 = vld [vmem:[#allocation7 + $0x8] sm:$0xff] }
  0x3a   :  { %433 = vmatpush3.bf16.msra.mxu0 %v430_v3  ;;  %v180_v14 = vld [vmem:[#allocation7 + $0x10] sm:$0xff]  ;;  %v181_v15 = vld [vmem:[#allocation7 + $0x18] sm:$0xff]  ;;  %v462_v16 = vpack.c.bf16 %v179_v13, %v178_v12  ;;  %v442_v18 = vpack.c.bf16 %v73_v11, %v72_v10  ;;  %v182_v19 = vld [vmem:[#allocation7 + $0x20] sm:$0xff] }
  0x3b   :  { %435 = vmatprep.subr.bf16.mxu0 %v434_v5  ;;  %v466_v17 = vpack.c.bf16 %v181_v15, %v180_v14  ;;  %v183_v20 = vld [vmem:[#allocation7 + $0x28] sm:$0xff]  ;;  %v74_v21 = vld [vmem:[#allocation5 + $0x40] sm:$0xff]  ;;  %v184_v25 = vld [vmem:[#allocation7 + $0x30] sm:$0xff] }
  0x3c   :  { %v75_v22 = vld [vmem:[#allocation5 + $0x48] sm:$0xff]  ;;  %463 = vmatprep.subr.bf16.mxu1 %v462_v16  ;;  %v470_v23 = vpack.c.bf16 %v183_v20, %v182_v19  ;;  %v185_v26 = vld [vmem:[#allocation7 + $0x38] sm:$0xff]  ;;  %v76_v27 = vld [vmem:[#allocation5 + $0x50] sm:$0xff] }
  0x3d   :  { %465 = vmatpush3.bf16.msra.mxu1 %v462_v16  ;;  %v446_v24 = vpack.c.bf16 %v75_v22, %v74_v21  ;;  %v77_v28 = vld [vmem:[#allocation5 + $0x58] sm:$0xff]  ;;  %v474_v29 = vpack.c.bf16 %v185_v26, %v184_v25  ;;  %v186_v31 = vld [vmem:[#allocation7 + $0x40] sm:$0xff]  ;;  %v187_v32 = vld [vmem:[#allocation7 + $0x48] sm:$0xff] }
  0x3e   :  { %437 = vmatpush3.bf16.msra.mxu0 %v434_v5  ;;  %467 = vmatprep.subr.bf16.mxu1 %v466_v17  ;;  %v450_v30 = vpack.c.bf16 %v77_v28, %v76_v27  ;;  %v78_v33 = vld [vmem:[#allocation5 + $0x60] sm:$0xff]  ;;  %v79_v34 = vld [vmem:[#allocation5 + $0x68] sm:$0xff]  ;;  %v478_v35 = vpack.c.bf16 %v187_v32, %v186_v31  ;;  %v188_v37 = vld [vmem:[#allocation7 + $0x50] sm:$0xff] }
  0x3f   :  { %439 = vmatprep.subr.bf16.mxu0 %v438_v8  ;;  %v454_v36 = vpack.c.bf16 %v79_v34, %v78_v33  ;;  %v189_v38 = vld [vmem:[#allocation7 + $0x58] sm:$0xff]  ;;  %v80_v39 = vld [vmem:[#allocation5 + $0x70] sm:$0xff]  ;;  %v190_v43 = vld [vmem:[#allocation7 + $0x60] sm:$0xff] }
  0x40   :  { %v81_v40 = vld [vmem:[#allocation5 + $0x78] sm:$0xff]  ;;  %v482_v41 = vpack.c.bf16 %v189_v38, %v188_v37  ;;  %v191_v44 = vld [vmem:[#allocation7 + $0x68] sm:$0xff]  ;;  %v64_v47 = vld [vmem:[#allocation2 + $0x10] sm:$0xff] }
  0x41   :  { %469 = vmatpush3.bf16.msra.mxu1 %v466_v17  ;;  %v458_v42 = vpack.c.bf16 %v81_v40, %v80_v39  ;;  %v486_v45 = vpack.c.bf16 %v191_v44, %v190_v43  ;;  %v63_v46 = vld [vmem:[#allocation2 + $0x8] sm:$0xff]  ;;  %v65_v48 = vld [vmem:[#allocation2 + $0x18] sm:$0xff]  ;;  %v192_v49 = vld [vmem:[#allocation7 + $0x70] sm:$0xff] }
  0x42   :  { %441 = vmatpush3.bf16.msra.mxu0 %v438_v8  ;;  %471 = vmatprep.subr.bf16.mxu1 %v470_v23  ;;  %v193_v50 = vld [vmem:[#allocation7 + $0x78] sm:$0xff]  ;;  %v312_v52 = vld [vmem:[%s709_s2] ss:$0 sm:$0xff]  ;;  %s599_s2 = smov [#allocation8]  }
  0x43   :  { %443 = vmatprep.subr.bf16.mxu0 %v442_v18  ;;  %v490_v51 = vpack.c.bf16 %v193_v50, %v192_v49  ;;  %v313_v1 = vld [vmem:[%s711_s4] ss:$0 sm:$0xff]  ;;  %s299_s9 = sshll.u32 %s599_s2, 4  ;;  %s300_s9 = int_to_ptr.vmem [resolvable:$true] %s299_s9 }
  0x44   :  { %s566_s4 = scalar_lea.vmem %s300_s9, 512  ;;  %p571_p11 = scmp.lt.s32.totalorder %s300_s9, %s300_s9 }
  0x45   :  { %473 = vmatpush3.bf16.msra.mxu1 %v470_v23  ;;  %p567_p10 = scmp.ne.s32.totalorder %s300_s9, %s566_s4  ;;  %p572_p12 = scmp.lt.s32.totalorder %s566_s4, %s566_s4 }
  0x46   :  { %445 = vmatpush3.bf16.msra.mxu0 %v442_v18  ;;  %475 = vmatprep.subr.bf16.mxu1 %v474_v29 }
  0x47   :  { %447 = vmatprep.subr.bf16.mxu0 %v446_v24  ;;  %p573_p13 = por %p572_p12, %p571_p11 }
  0x49   :  { %477 = vmatpush3.bf16.msra.mxu1 %v474_v29  ;;  %p574_p0 = pnand %p573_p13, %p567_p10 }
  0x4a   :  { %449 = vmatpush3.bf16.msra.mxu0 %v446_v24  ;;  %479 = vmatprep.subr.bf16.mxu1 %v478_v35 }
  0x4b   :  { %451 = vmatprep.subr.bf16.mxu0 %v450_v30 }
  0x4d   :  { %481 = vmatpush3.bf16.msra.mxu1 %v478_v35 }
  0x4e   :  { %453 = vmatpush3.bf16.msra.mxu0 %v450_v30  ;;  %483 = vmatprep.subr.bf16.mxu1 %v482_v41 }
  0x4f   :  { %455 = vmatprep.subr.bf16.mxu0 %v454_v36 }
  0x51   :  { %485 = vmatpush3.bf16.msra.mxu1 %v482_v41 }
  0x52   :  { %457 = vmatpush3.bf16.msra.mxu0 %v454_v36  ;;  %487 = vmatprep.subr.bf16.mxu1 %v486_v45 }
  0x53   :  { %459 = vmatprep.subr.bf16.mxu0 %v458_v42 }
  0x55   :  { %489 = vmatpush3.bf16.msra.mxu1 %v486_v45 }
  0x56   :  { %461 = vmatpush3.bf16.msra.mxu0 %v458_v42  ;;  %491 = vmatprep.subr.bf16.mxu1 %v490_v51 }
  0x59   :  { %387 = vmatmul.mubr.f32.vlgmr.msra.gmra.mrb[0].mxu0 %v63_v46  ;;  %493 = vmatpush3.bf16.msra.mxu1 %v490_v51 }
  0x5a   :  { %389 = vmatprep.mubr.f32.mxu0 %v64_v47 }
  0x5d   :  { %390 = vmatmul.mubr.f32.gmra.mrb[2].mxu0 %v65_v48 }
 0x12c   :  { %v388_v53 = vpop.f32.mrb[0].mxu0 }
 0x12d   :  { %v161_v54 = vadd.f32 %v388_v53, %v312_v52  ;;  %v155_v55 = vpop.f32.mrb[1].mxu0 }
 0x12e   :  { %v156_v56 = vadd.f32 %v312_v52, %v155_v55 }
 0x12f   :  { %v175_v59 = vmax.f32 %v161_v54, 0.0 }
 0x130   :  { %v391_v57 = vpop.f32.mrb[2].mxu0  ;;  %v174_v58 = vmax.f32 %v156_v56, 0.0 }
 0x131   :  { %v171_v60 = vadd.f32 %v391_v57, %v312_v52  ;;  %v165_v61 = vpop.f32.mrb[3].mxu0 }
 0x132   :  { %v166_v62 = vadd.f32 %v312_v52, %v165_v61  ;;  %424 = vmatprep.mubr.f32.mxu1 %v174_v58 }
 0x133   :  { %425 = vmatmul.mubr.f32.vlgmr.msra.gmra.mrb[0].mxu1 %v175_v59  ;;  %v177_v0 = vmax.f32 %v171_v60, 0.0 }
 0x134   :  { %v176_v63 = vmax.f32 %v166_v62, 0.0 }
 0x136   :  { %427 = vmatprep.mubr.f32.mxu1 %v176_v63 }
 0x137   :  { %428 = vmatmul.mubr.f32.gmra.mrb[2].mxu1 %v177_v0 }
 0x206   :  { %v426_v2 = vpop.f32.mrb[0].mxu1 }
 0x207   :  { %v273_v3 = vadd.f32 %v426_v2, %v313_v1  ;;  %v267_v4 = vpop.f32.mrb[1].mxu1 }
 0x208   :  { %v268_v5 = vadd.f32 %v313_v1, %v267_v4 }
 0x209   :  { %v287_v6 = vadd.f32 %v273_v3, %v63_v46 }
 0x20a   :  { %v286_v7 = vadd.f32 %v268_v5, %v682_v9  ;;  %v429_v8 = vpop.f32.mrb[2].mxu1 }
 0x20b   :  { %291 = vst [vmem:[#allocation8 + $0x8] sm:$0xff] %v287_v6  ;;  %v283_v10 = vadd.f32 %v429_v8, %v313_v1  ;;  %v277_v11 = vpop.f32.mrb[3].mxu1 }
 0x20c   :  { %290 = vst [vmem:[#allocation8] sm:$0xff] %v286_v7  ;;  %v278_v12 = vadd.f32 %v313_v1, %v277_v11 }
 0x20d   :  { %v289_v13 = vadd.f32 %v283_v10, %v65_v48 }
 0x20e   :  { %v288_v14 = vadd.f32 %v278_v12, %v64_v47 }
 0x20f   :  { %293 = vst [vmem:[#allocation8 + $0x18] sm:$0xff] %v289_v13 }
 0x210   :  { %292 = vst [vmem:[#allocation8 + $0x10] sm:$0xff] %v288_v14 }
 0x211   :  { %577 = shalt.err (!%p574_p0)
}
 0x212   :  { %s578_s12 = scalar_lea.hbm %s712_s5, 512 }
 0x213   :  { %p579_p1 = scmp.ne.s32.totalorder %s712_s5, %s578_s12  ;;  %p582_p2 = scmp.lt.u32.totalorder %s578_s12, %s712_s5 }
 0x215   :  { %p584_p3 = pnand %p582_p2, %p579_p1 }
 0x217   :  { %587 = shalt.err (!%p584_p3)
}
 0x218   :  { %305 = dma.vmem_to_hbm [thread:$0]  %s300_s9, 512, %s712_s5, [#allocation4], %s596_s30, %s596_s30, %s597_s6  }
 0x219   :  { %592 = dma.done.wait [#allocation4], 512  }
 0x21a   :  { %593 = vsyncadd [#allocation4], 4294966784 }
 0x21b   :  { %309 = vsyncpa [#allocation3], 1 }
 0x21c   :  { %310 = vsyncpa [#allocation6], 1 }
 0x21d   :  { %311 = vsyncpa [#allocation4], 1 }

// kernel: tpu_custom_call.1
= control target key start
LH: loop header
LB: loop body
LE: loop exit
PB: predicated region body
PF: predicated region fallthrough
CT: control target
= control target key end

     0   :  { %10 = vsyncpa [#allocation3], 0  ;;  %s707_s0 = inlined_call_operand.hbm [shape: f32[32,128], index: 0, kind: input, shape index: {}]   ;;  %s708_s1 = inlined_call_operand.hbm [shape: f32[128,128], index: 1, kind: input, shape index: {}]   ;;  %s709_s2 = inlined_call_operand.vmem [shape: f32[1,128], index: 2, kind: input, shape index: {}]   ;;  %s710_s3 = inlined_call_operand.hbm [shape: f32[128,128], index: 3, kind: input, shape index: {}]   ;;  %s711_s4 = inlined_call_operand.vmem [shape: f32[1,128], index: 4, kind: input, shape index: {}]   ;;  %s712_s5 = inlined_call_operand.hbm [shape: f32[32,128], index: 5, kind: output, shape index: {}]  }
   0x1   :  { %11 = vsyncpa [#allocation6], 0 }
   0x2   :  { %12 = vsyncpa [#allocation4], 0  ;;  %s594_s18 = smov [#allocation5]   ;;  %s595_s20 = smov [#allocation2]  }
   0x3   :  { %s30_s19 = sshll.u32 %s594_s18, 4  ;;  %s18_s21 = sshll.u32 %s595_s20, 4  ;;  %s31_s19 = int_to_ptr.vmem [resolvable:$true] %s30_s19  ;;  %s630_s21 = int_to_ptr.vmem [resolvable:$true] %s18_s21 }
   0x4   :  { %s500_s24 = scalar_lea.hbm %s708_s1, 2048 }
   0x5   :  { %p501_p0 = scmp.ne.s32.totalorder %s708_s1, %s500_s24  ;;  %p504_p1 = scmp.lt.u32.totalorder %s500_s24, %s708_s1 }
   0x7   :  { %p506_p2 = pnand %p504_p1, %p501_p0 }
   0x9   :  { %509 = shalt.err (!%p506_p2)
}
   0xa   :  { %s510_s29 = scalar_lea.vmem %s31_s19, 2048  ;;  %p515_p4 = scmp.lt.s32.totalorder %s31_s19, %s31_s19 }
   0xb   :  { %p511_p3 = scmp.ne.s32.totalorder %s31_s19, %s510_s29  ;;  %p516_p5 = scmp.lt.s32.totalorder %s510_s29, %s510_s29 }
   0xd   :  { %p517_p6 = por %p516_p5, %p515_p4 }
   0xf   :  { %p518_p7 = pnand %p517_p6, %p511_p3 }
  0x11   :  { %521 = shalt.err (!%p518_p7)
}
  0x12   :  { %s596_s30 = smov 128   ;;  %s597_s6 = smov 8  }
  0x13   :  { %36 = dma.hbm_to_vmem [thread:$0]  %s708_s1, 2048, %s31_s19, [#allocation6], %s596_s30, %s596_s30, %s597_s6  }
  0x14   :  { %s522_s11 = scalar_lea.hbm %s707_s0, 512 }
  0x15   :  { %p523_p8 = scmp.ne.s32.totalorder %s707_s0, %s522_s11  ;;  %p526_p9 = scmp.lt.u32.totalorder %s522_s11, %s707_s0 }
  0x17   :  { %p528_p10 = pnand %p526_p9, %p523_p8 }
  0x19   :  { %531 = shalt.err (!%p528_p10)
}
  0x1a   :  { %s532_s16 = scalar_lea.vmem %s630_s21, 512  ;;  %p537_p12 = scmp.lt.s32.totalorder %s630_s21, %s630_s21 }
  0x1b   :  { %p533_p11 = scmp.ne.s32.totalorder %s630_s21, %s532_s16  ;;  %p538_p13 = scmp.lt.s32.totalorder %s532_s16, %s532_s16 }
  0x1d   :  { %p539_p0 = por %p538_p13, %p537_p12 }
  0x1f   :  { %p540_p1 = pnand %p539_p0, %p533_p11 }
  0x21   :  { %543 = shalt.err (!%p540_p1)
}
  0x22   :  { %24 = dma.hbm_to_vmem [thread:$0]  %s707_s0, 512, %s630_s21, [#allocation3], %s596_s30, %s596_s30, %s597_s6  }
  0x23   :  { %s598_s18 = smov [#allocation7]   ;;  %s544_s23 = scalar_lea.hbm %s710_s3, 2048 }
  0x24   :  { %s44_s19 = sshll.u32 %s598_s18, 4  ;;  %p545_p2 = scmp.ne.s32.totalorder %s710_s3, %s544_s23  ;;  %s45_s19 = int_to_ptr.vmem [resolvable:$true] %s44_s19 }
  0x25   :  { %p548_p3 = scmp.lt.u32.totalorder %s544_s23, %s710_s3 }
  0x27   :  { %p550_p4 = pnand %p548_p3, %p545_p2 }
  0x29   :  { %553 = shalt.err (!%p550_p4)
}
  0x2a   :  { %s554_s28 = scalar_lea.vmem %s45_s19, 2048  ;;  %p559_p6 = scmp.lt.s32.totalorder %s45_s19, %s45_s19 }
  0x2b   :  { %p555_p5 = scmp.ne.s32.totalorder %s45_s19, %s554_s28  ;;  %p560_p7 = scmp.lt.s32.totalorder %s554_s28, %s554_s28 }
  0x2d   :  { %p561_p8 = por %p560_p7, %p559_p6 }
  0x2f   :  { %p562_p9 = pnand %p561_p8, %p555_p5 }
  0x31   :  { %565 = shalt.err (!%p562_p9)
}
  0x32   :  { %50 = dma.hbm_to_vmem [thread:$0]  %s710_s3, 2048, %s45_s19, [#allocation6], %s596_s30, %s596_s30, %s597_s6  }
  0x33   :  { %588 = dma.done.wait [#allocation3], 512  }
  0x34   :  { %589 = vsyncadd [#allocation3], 4294966784 }
  0x35   :  { %590 = dma.done.wait [#allocation6], 4096  }
  0x36   :  { %591 = vsyncadd [#allocation6], 4294963200  ;;  %v66_v0 = vld [vmem:[#allocation5] sm:$0xff]  ;;  %v67_v1 = vld [vmem:[#allocation5 + $0x8] sm:$0xff] }
  0x37   :  { %v68_v2 = vld [vmem:[#allocation5 + $0x10] sm:$0xff]  ;;  %v430_v3 = vpack.c.bf16 %v67_v1, %v66_v0  ;;  %v69_v4 = vld [vmem:[#allocation5 + $0x18] sm:$0xff]  ;;  %v70_v6 = vld [vmem:[#allocation5 + $0x20] sm:$0xff] }
  0x38   :  { %v434_v5 = vpack.c.bf16 %v69_v4, %v68_v2  ;;  %v71_v7 = vld [vmem:[#allocation5 + $0x28] sm:$0xff]  ;;  %v682_v9 = vld [vmem:[#allocation2] sm:$0xff]  ;;  %v72_v10 = vld [vmem:[#allocation5 + $0x30] sm:$0xff] }
  0x39   :  { %431 = vmatprep.subr.bf16.mxu0 %v430_v3  ;;  %v438_v8 = vpack.c.bf16 %v71_v7, %v70_v6  ;;  %v73_v11 = vld [vmem:[#allocation5 + $0x38] sm:$0xff]  ;;  %386 = vmatprep.mubr.f32.mxu0 %v682_v9  ;;  %v178_v12 = vld [vmem:[#allocation7] sm:$0xff]  ;;  %v179_v13 = vld [vmem:[#allocation7 + $0x8] sm:$0xff] }
  0x3a   :  { %433 = vmatpush3.bf16.msra.mxu0 %v430_v3  ;;  %v180_v14 = vld [vmem:[#allocation7 + $0x10] sm:$0xff]  ;;  %v181_v15 = vld [vmem:[#allocation7 + $0x18] sm:$0xff]  ;;  %v462_v16 = vpack.c.bf16 %v179_v13, %v178_v12  ;;  %v442_v18 = vpack.c.bf16 %v73_v11, %v72_v10  ;;  %v182_v19 = vld [vmem:[#allocation7 + $0x20] sm:$0xff] }
  0x3b   :  { %435 = vmatprep.subr.bf16.mxu0 %v434_v5  ;;  %v466_v17 = vpack.c.bf16 %v181_v15, %v180_v14  ;;  %v183_v20 = vld [vmem:[#allocation7 + $0x28] sm:$0xff]  ;;  %v74_v21 = vld [vmem:[#allocation5 + $0x40] sm:$0xff]  ;;  %v184_v25 = vld [vmem:[#allocation7 + $0x30] sm:$0xff] }
  0x3c   :  { %v75_v22 = vld [vmem:[#allocation5 + $0x48] sm:$0xff]  ;;  %463 = vmatprep.subr.bf16.mxu1 %v462_v16  ;;  %v470_v23 = vpack.c.bf16 %v183_v20, %v182_v19  ;;  %v185_v26 = vld [vmem:[#allocation7 + $0x38] sm:$0xff]  ;;  %v76_v27 = vld [vmem:[#allocation5 + $0x50] sm:$0xff] }
  0x3d   :  { %465 = vmatpush3.bf16.msra.mxu1 %v462_v16  ;;  %v446_v24 = vpack.c.bf16 %v75_v22, %v74_v21  ;;  %v77_v28 = vld [vmem:[#allocation5 + $0x58] sm:$0xff]  ;;  %v474_v29 = vpack.c.bf16 %v185_v26, %v184_v25  ;;  %v186_v31 = vld [vmem:[#allocation7 + $0x40] sm:$0xff]  ;;  %v187_v32 = vld [vmem:[#allocation7 + $0x48] sm:$0xff] }
  0x3e   :  { %437 = vmatpush3.bf16.msra.mxu0 %v434_v5  ;;  %467 = vmatprep.subr.bf16.mxu1 %v466_v17  ;;  %v450_v30 = vpack.c.bf16 %v77_v28, %v76_v27  ;;  %v78_v33 = vld [vmem:[#allocation5 + $0x60] sm:$0xff]  ;;  %v79_v34 = vld [vmem:[#allocation5 + $0x68] sm:$0xff]  ;;  %v478_v35 = vpack.c.bf16 %v187_v32, %v186_v31  ;;  %v188_v37 = vld [vmem:[#allocation7 + $0x50] sm:$0xff] }
  0x3f   :  { %439 = vmatprep.subr.bf16.mxu0 %v438_v8  ;;  %v454_v36 = vpack.c.bf16 %v79_v34, %v78_v33  ;;  %v189_v38 = vld [vmem:[#allocation7 + $0x58] sm:$0xff]  ;;  %v80_v39 = vld [vmem:[#allocation5 + $0x70] sm:$0xff]  ;;  %v190_v43 = vld [vmem:[#allocation7 + $0x60] sm:$0xff] }
  0x40   :  { %v81_v40 = vld [vmem:[#allocation5 + $0x78] sm:$0xff]  ;;  %v482_v41 = vpack.c.bf16 %v189_v38, %v188_v37  ;;  %v191_v44 = vld [vmem:[#allocation7 + $0x68] sm:$0xff]  ;;  %v64_v47 = vld [vmem:[#allocation2 + $0x10] sm:$0xff] }
  0x41   :  { %469 = vmatpush3.bf16.msra.mxu1 %v466_v17  ;;  %v458_v42 = vpack.c.bf16 %v81_v40, %v80_v39  ;;  %v486_v45 = vpack.c.bf16 %v191_v44, %v190_v43  ;;  %v63_v46 = vld [vmem:[#allocation2 + $0x8] sm:$0xff]  ;;  %v65_v48 = vld [vmem:[#allocation2 + $0x18] sm:$0xff]  ;;  %v192_v49 = vld [vmem:[#allocation7 + $0x70] sm:$0xff] }
  0x42   :  { %441 = vmatpush3.bf16.msra.mxu0 %v438_v8  ;;  %471 = vmatprep.subr.bf16.mxu1 %v470_v23  ;;  %v193_v50 = vld [vmem:[#allocation7 + $0x78] sm:$0xff]  ;;  %v312_v52 = vld [vmem:[%s709_s2] ss:$0 sm:$0xff]  ;;  %s599_s2 = smov [#allocation8]  }
  0x43   :  { %443 = vmatprep.subr.bf16.mxu0 %v442_v18  ;;  %v490_v51 = vpack.c.bf16 %v193_v50, %v192_v49  ;;  %v313_v1 = vld [vmem:[%s711_s4] ss:$0 sm:$0xff]  ;;  %s299_s9 = sshll.u32 %s599_s2, 4  ;;  %s300_s9 = int_to_ptr.vmem [resolvable:$true] %s299_s9 }
  0x44   :  { %s566_s4 = scalar_lea.vmem %s300_s9, 512  ;;  %p571_p11 = scmp.lt.s32.totalorder %s300_s9, %s300_s9 }
  0x45   :  { %473 = vmatpush3.bf16.msra.mxu1 %v470_v23  ;;  %p567_p10 = scmp.ne.s32.totalorder %s300_s9, %s566_s4  ;;  %p572_p12 = scmp.lt.s32.totalorder %s566_s4, %s566_s4 }
  0x46   :  { %445 = vmatpush3.bf16.msra.mxu0 %v442_v18  ;;  %475 = vmatprep.subr.bf16.mxu1 %v474_v29 }
  0x47   :  { %447 = vmatprep.subr.bf16.mxu0 %v446_v24  ;;  %p573_p13 = por %p572_p12, %p571_p11 }
  0x49   :  { %477 = vmatpush3.bf16.msra.mxu1 %v474_v29  ;;  %p574_p0 = pnand %p573_p13, %p567_p10 }
  0x4a   :  { %449 = vmatpush3.bf16.msra.mxu0 %v446_v24  ;;  %479 = vmatprep.subr.bf16.mxu1 %v478_v35 }
  0x4b   :  { %451 = vmatprep.subr.bf16.mxu0 %v450_v30 }
  0x4d   :  { %481 = vmatpush3.bf16.msra.mxu1 %v478_v35 }
  0x4e   :  { %453 = vmatpush3.bf16.msra.mxu0 %v450_v30  ;;  %483 = vmatprep.subr.bf16.mxu1 %v482_v41 }
  0x4f   :  { %455 = vmatprep.subr.bf16.mxu0 %v454_v36 }
  0x51   :  { %485 = vmatpush3.bf16.msra.mxu1 %v482_v41 }
  0x52   :  { %457 = vmatpush3.bf16.msra.mxu0 %v454_v36  ;;  %487 = vmatprep.subr.bf16.mxu1 %v486_v45 }
  0x53   :  { %459 = vmatprep.subr.bf16.mxu0 %v458_v42 }
  0x55   :  { %489 = vmatpush3.bf16.msra.mxu1 %v486_v45 }
  0x56   :  { %461 = vmatpush3.bf16.msra.mxu0 %v458_v42  ;;  %491 = vmatprep.subr.bf16.mxu1 %v490_v51 }
  0x59   :  { %387 = vmatmul.mubr.f32.vlgmr.msra.gmra.mrb[0].mxu0 %v63_v46  ;;  %493 = vmatpush3.bf16.msra.mxu1 %v490_v51 }
  0x5a   :  { %389 = vmatprep.mubr.f32.mxu0 %v64_v47 }
  0x5d   :  { %390 = vmatmul.mubr.f32.gmra.mrb[2].mxu0 %v65_v48 }
 0x12c   :  { %v388_v53 = vpop.f32.mrb[0].mxu0 }
 0x12d   :  { %v161_v54 = vadd.f32 %v388_v53, %v312_v52  ;;  %v155_v55 = vpop.f32.mrb[1].mxu0 }
 0x12e   :  { %v156_v56 = vadd.f32 %v312_v52, %v155_v55 }
 0x12f   :  { %v175_v59 = vmax.f32 %v161_v54, 0.0 }
 0x130   :  { %v391_v57 = vpop.f32.mrb[2].mxu0  ;;  %v174_v58 = vmax.f32 %v156_v56, 0.0 }
 0x131   :  { %v171_v60 = vadd.f32 %v391_v57, %v312_v52  ;;  %v165_v61 = vpop.f32.mrb[3].mxu0 }
 0x132   :  { %v166_v62 = vadd.f32 %v312_v52, %v165_v61  ;;  %424 = vmatprep.mubr.f32.mxu1 %v174_v58 }
 0x133   :  { %425 = vmatmul.mubr.f32.vlgmr.msra.gmra.mrb[0].mxu1 %v175_v59  ;;  %v177_v0 = vmax.f32 %v171_v60, 0.0 }
 0x134   :  { %v176_v63 = vmax.f32 %v166_v62, 0.0 }
 0x136   :  { %427 = vmatprep.mubr.f32.mxu1 %v176_v63 }
 0x137   :  { %428 = vmatmul.mubr.f32.gmra.mrb[2].mxu1 %v177_v0 }
 0x206   :  { %v426_v2 = vpop.f32.mrb[0].mxu1 }
 0x207   :  { %v273_v3 = vadd.f32 %v426_v2, %v313_v1  ;;  %v267_v4 = vpop.f32.mrb[1].mxu1 }
 0x208   :  { %v268_v5 = vadd.f32 %v313_v1, %v267_v4 }
 0x209   :  { %v287_v6 = vadd.f32 %v273_v3, %v63_v46 }
 0x20a   :  { %v286_v7 = vadd.f32 %v268_v5, %v682_v9  ;;  %v429_v8 = vpop.f32.mrb[2].mxu1 }
 0x20b   :  { %291 = vst [vmem:[#allocation8 + $0x8] sm:$0xff] %v287_v6  ;;  %v283_v10 = vadd.f32 %v429_v8, %v313_v1  ;;  %v277_v11 = vpop.f32.mrb[3].mxu1 }
 0x20c   :  { %290 = vst [vmem:[#allocation8] sm:$0xff] %v286_v7  ;;  %v278_v12 = vadd.f32 %v313_v1, %v277_v11 }
 0x20d   :  { %v289_v13 = vadd.f32 %v283_v10, %v65_v48 }
 0x20e   :  { %v288_v14 = vadd.f32 %v278_v12, %v64_v47 }
 0x20f   :  { %293 = vst [vmem:[#allocation8 + $0x18] sm:$0xff] %v289_v13 }
 0x210   :  { %292 = vst [vmem:[#allocation8 + $0x10] sm:$0xff] %v288_v14 }
 0x211   :  { %577 = shalt.err (!%p574_p0)
}
 0x212   :  { %s578_s12 = scalar_lea.hbm %s712_s5, 512 }
 0x213   :  { %p579_p1 = scmp.ne.s32.totalorder %s712_s5, %s578_s12  ;;  %p582_p2 = scmp.lt.u32.totalorder %s578_s12, %s712_s5 }
 0x215   :  { %p584_p3 = pnand %p582_p2, %p579_p1 }
 0x217   :  { %587 = shalt.err (!%p584_p3)
}
 0x218   :  { %305 = dma.vmem_to_hbm [thread:$0]  %s300_s9, 512, %s712_s5, [#allocation4], %s596_s30, %s596_s30, %s597_s6  }
 0x219   :  { %592 = dma.done.wait [#allocation4], 512  }
 0x21a   :  { %593 = vsyncadd [#allocation4], 4294966784 }
 0x21b   :  { %309 = vsyncpa [#allocation3], 1 }
 0x21c   :  { %310 = vsyncpa [#allocation6], 1 }
 0x21d   :  { %311 = vsyncpa [#allocation4], 1 }

</bundles_post_ra>
